<compile_context>
chip_gen: v6e
topology: v6e:2x2x1
jax: 0.10.0
libtpu: 0.0.40
codegen_flags: <defaults>
</compile_context>

<pallas_src>
import jax
import jax.numpy as jnp
from jax.experimental import pallas as pl
from jax.experimental.pallas import tpu as pltpu


def _round_up(x, m):
    return (x + m - 1) // m * m


def _space_to_depth(x):
    """Matches torch.cat([x[...,::2,::2], x[...,1::2,::2], x[...,::2,1::2], x[...,1::2,1::2]], 1)."""
    return jnp.concatenate(
        [x[..., ::2, ::2], x[..., 1::2, ::2], x[..., ::2, 1::2], x[..., 1::2, 1::2]],
        axis=1,
    )


def _fold_bn_into_pw_conv(conv_w, gamma, beta, mean, var, eps):
    """Fold eval-mode BatchNorm2d into a bias-free 1x1 conv.

    conv_w: (C2, Cin4, 1, 1). Returns (w_fused: (C2, Cin4), b_fused: (C2, 1)).
    """
    c2 = conv_w.shape[0]
    scale = gamma / jnp.sqrt(var + eps)                      # (C2,)
    w_fused = conv_w.reshape(c2, -1) * scale[:, None]        # (C2, Cin4)
    b_fused = (beta - mean * scale)[:, None]                 # (C2, 1)
    return w_fused, b_fused


def _focus_pw_conv_kernel(x_ref, w_ref, b_ref, o_ref):
    # x_ref: (Cin4, m_tile)   w_ref: (C2, Cin4)   b_ref: (C2, 1)   o_ref: (C2, m_tile)
    y = jnp.dot(w_ref[...], x_ref[...], preferred_element_type=jnp.float32)
    y = y + b_ref[...]                                        # fused BN shift (lane-broadcast)
    o_ref[...] = (y * jax.nn.sigmoid(y)).astype(o_ref.dtype)  # SiLU


def focus_forward(x, conv_w, gamma, beta, mean, var, eps=1e-5, max_tile=16384):
    """x: (B, C1, H, W) f32, conv_w: (C2, 4*C1, 1, 1), BN params: (C2,). Returns (B, C2, H//2, W//2).

    NOTE: like the PyTorch module, this is only meaningful for even H, W.
    """
    B, C1, H, W = x.shape
    C2 = conv_w.shape[0]
    H2, W2 = H // 2, W // 2
    Cin4 = 4 * C1
    HW2 = H2 * W2

    # ---- layout plumbing (wrapper side): space-to-depth, kept NCHW; flat spatial is a free reshape ----
    p = _space_to_depth(x).reshape(B, Cin4, HW2)              # (B, Cin4, H2*W2)

    # ---- fold BN into the 1x1 conv ----
    w_fused, b_fused = _fold_bn_into_pw_conv(conv_w, gamma, beta, mean, var, eps)

    # ---- spatial tiling: big lane-dense tiles (multiple of 128), balanced tile count ----
    n_tiles = max(1, pl.cdiv(HW2, max_tile))
    if n_tiles > 1:
        n_tiles = _round_up(n_tiles, 2)                       # even split for v7x's 2 TensorCores
    m_tile = _round_up(pl.cdiv(HW2, n_tiles), 128)
    HW2_pad = _round_up(HW2, m_tile)
    n_tiles = HW2_pad // m_tile
    if HW2_pad != HW2:
        p = jnp.pad(p, ((0, 0), (0, 0), (0, HW2_pad - HW2)))  # padded pixels sliced off below

    # ---- VMEM budget from (8,128)-padded tile sizes, double-buffered streamed operands ----
    f32 = 4
    x_tile_bytes = _round_up(Cin4, 8) * m_tile * f32
    o_tile_bytes = _round_up(C2, 8) * m_tile * f32
    w_bytes = _round_up(C2, 8) * _round_up(Cin4, 128) * f32
    b_bytes = _round_up(C2, 8) * 128 * f32
    vmem_bytes = 2 * (x_tile_bytes + o_tile_bytes + w_bytes + b_bytes) + 2 * o_tile_bytes
    vmem_limit = int(min(max(vmem_bytes + vmem_bytes // 2 + (2 << 20), 8 << 20), 64 << 20))

    out_flat = pl.pallas_call(
        _focus_pw_conv_kernel,
        out_shape=jax.ShapeDtypeStruct((B, C2, HW2_pad), x.dtype),
        grid_spec=pltpu.PrefetchScalarGridSpec(
            num_scalar_prefetch=0,
            grid=(B, n_tiles),
            in_specs=[
                pl.BlockSpec((None, Cin4, m_tile), lambda b, t: (b, 0, t)),  # streamed pixels (lanes)
                pl.BlockSpec((C2, Cin4), lambda b, t: (0, 0)),               # resident fused weight
                pl.BlockSpec((C2, 1), lambda b, t: (0, 0)),                  # resident fused bias
            ],
            out_specs=pl.BlockSpec((None, C2, m_tile), lambda b, t: (b, 0, t)),
        ),
        compiler_params=pltpu.CompilerParams(
            dimension_semantics=("parallel", "parallel"),
            vmem_limit_bytes=vmem_limit,
            allow_input_fusion=[True, False, False],
        ),
        cost_estimate=pl.CostEstimate(
            flops=2 * B * HW2_pad * Cin4 * C2,
            transcendentals=B * HW2_pad * C2,
            bytes_accessed=(B * HW2_pad * (Cin4 + C2) + Cin4 * C2 + C2) * f32,
        ),
    )(p, w_fused, b_fused)

    if HW2_pad != HW2:
        out_flat = out_flat[:, :, :HW2]
    return out_flat.reshape(B, C2, H2, W2)                    # already NCHW — no trailing transpose


def focus_ref(x, conv_w, gamma, beta, mean, var, eps=1e-5):
    """Plain-JAX reference mirroring the PyTorch forward (eval-mode BN)."""
    p = _space_to_depth(x)                                    # (B, 4C1, H2, W2)
    w2d = conv_w.reshape(conv_w.shape[0], -1)                 # (C2, 4C1)
    y = jnp.einsum("bchw,oc->bohw", p, w2d)                   # 1x1 conv, no bias
    inv = 1.0 / jnp.sqrt(var + eps)
    y = (y - mean[None, :, None, None]) * inv[None, :, None, None] \
        * gamma[None, :, None, None] + beta[None, :, None, None]
    return y * jax.nn.sigmoid(y)                              # SiLU


if __name__ == "__main__":
    # Small shapes consistent with Focus: c1=4 -> conv sees 4*c1=16 channels, c2=32.
    B, C1, H, W = 2, 4, 16, 16
    C2 = 32

    key = jax.random.PRNGKey(0)
    kx, kw, kg, kb, km, kv = jax.random.split(key, 6)

    x = jax.random.normal(kx, (B, C1, H, W), dtype=jnp.float32)
    conv_w = jax.random.normal(kw, (C2, 4 * C1, 1, 1), dtype=jnp.float32) * 0.1
    gamma = 1.0 + 0.1 * jax.random.normal(kg, (C2,), dtype=jnp.float32)
    beta = 0.1 * jax.random.normal(kb, (C2,), dtype=jnp.float32)
    mean = 0.1 * jax.random.normal(km, (C2,), dtype=jnp.float32)
    var = jnp.abs(jax.random.normal(kv, (C2,), dtype=jnp.float32)) + 0.5

    out = jax.block_until_ready(focus_forward(x, conv_w, gamma, beta, mean, var))
    ref = focus_ref(x, conv_w, gamma, beta, mean, var)

    assert out.shape == (B, C2, H // 2, W // 2), out.shape
    assert jnp.allclose(out, ref, atol=1e-4, rtol=1e-4), "mismatch vs reference"

    print("KERNEL_OK")
</pallas_src>

<mosaic_0001>
module attributes {stable_mosaic.version = 11 : i64} {
  func.func @_focus_pw_conv_kernel(%arg0: i32, %arg1: i32, %arg2: memref<1x16x128xf32, #tpu.memory_space<vmem>>, %arg3: memref<32x16xf32, #tpu.memory_space<vmem>>, %arg4: memref<32x1xf32, #tpu.memory_space<vmem>>, %arg5: memref<1x32x128xf32, #tpu.memory_space<vmem>>) attributes {dimension_semantics = [#tpu.dimension_semantics<parallel>, #tpu.dimension_semantics<parallel>], iteration_bounds = array<i64: 2, 1>, scalar_prefetch = 0 : i64, scratch_operands = 0 : i64, tpu.core_type = #tpu.core_type<tc>, window_params = [{transform_indices = @transform_0, window_bounds = array<i64: 1, 16, 128>}, {pipeline_mode = #tpu.pipeline_mode<synchronous>, transform_indices = @transform_1, window_bounds = array<i64: 32, 16>}, {pipeline_mode = #tpu.pipeline_mode<synchronous>, transform_indices = @transform_2, window_bounds = array<i64: 32, 1>}, {transform_indices = @transform_3, window_bounds = array<i64: 1, 32, 128>}]} {
    %c0 = arith.constant 0 : index
    %c0_0 = arith.constant 0 : index
    %0 = vector.load %arg3[%c0, %c0_0] : memref<32x16xf32, #tpu.memory_space<vmem>>, vector<32x16xf32>
    %c0_1 = arith.constant 0 : index
    %c0_2 = arith.constant 0 : index
    %c0_3 = arith.constant 0 : index
    %1 = vector.load %arg2[%c0_1, %c0_2, %c0_3] : memref<1x16x128xf32, #tpu.memory_space<vmem>>, vector<1x16x128xf32>
    %2 = vector.shape_cast %1 : vector<1x16x128xf32> to vector<16x128xf32>
    %cst = arith.constant dense<0.000000e+00> : vector<32x128xf32>
    %3 = tpu.matmul %0, %2, %cst {dimension_numbers = #tpu.dot_dimension_numbers<[1], [0], [0], [1], [0, 0, 1, 1], [], []>} : vector<32x16xf32>, vector<16x128xf32>, vector<32x128xf32> -> vector<32x128xf32>
    %c0_4 = arith.constant 0 : index
    %c0_5 = arith.constant 0 : index
    %4 = vector.load %arg4[%c0_4, %c0_5] : memref<32x1xf32, #tpu.memory_space<vmem>>, vector<32x1xf32>
    %5 = vector.broadcast %4 : vector<32x1xf32> to vector<32x128xf32>
    %6 = arith.addf %3, %5 : vector<32x128xf32>
    %7 = arith.negf %6 : vector<32x128xf32>
    %8 = math.exp %7 : vector<32x128xf32>
    %cst_6 = arith.constant 1.000000e+00 : f32
    %9 = vector.broadcast %cst_6 : f32 to vector<32x128xf32>
    %10 = arith.addf %9, %8 : vector<32x128xf32>
    %11 = arith.divf %9, %10 : vector<32x128xf32>
    %12 = arith.mulf %6, %11 : vector<32x128xf32>
    %c0_7 = arith.constant 0 : index
    %c0_8 = arith.constant 0 : index
    %c0_9 = arith.constant 0 : index
    %13 = vector.load %arg5[%c0_7, %c0_8, %c0_9] : memref<1x32x128xf32, #tpu.memory_space<vmem>>, vector<1x32x128xf32>
    %14 = vector.shape_cast %13 : vector<1x32x128xf32> to vector<32x128xf32>
    %15 = vector.shape_cast %12 : vector<32x128xf32> to vector<1x32x128xf32>
    tpu.vector_store %arg5[%c0_7, %c0_8, %c0_9], %15 {strides = array<i32>} : memref<1x32x128xf32, #tpu.memory_space<vmem>>, vector<1x32x128xf32>,
    return
  }
  func.func @transform_0(%arg0: i32, %arg1: i32) -> (i32, i32, i32) {
    %c0_i32 = arith.constant 0 : i32
    %c0_i32_0 = arith.constant 0 : i32
    return %arg0, %c0_i32, %arg1 : i32, i32, i32
  }
  func.func @transform_1(%arg0: i32, %arg1: i32) -> (i32, i32) {
    %c0_i32 = arith.constant 0 : i32
    %c0_i32_0 = arith.constant 0 : i32
    %c0_i32_1 = arith.constant 0 : i32
    return %c0_i32, %c0_i32_0 : i32, i32
  }
  func.func @transform_2(%arg0: i32, %arg1: i32) -> (i32, i32) {
    %c0_i32 = arith.constant 0 : i32
    %c0_i32_0 = arith.constant 0 : i32
    %c0_i32_1 = arith.constant 0 : i32
    return %c0_i32, %c0_i32_0 : i32, i32
  }
  func.func @transform_3(%arg0: i32, %arg1: i32) -> (i32, i32, i32) {
    %c0_i32 = arith.constant 0 : i32
    %c0_i32_0 = arith.constant 0 : i32
    return %arg0, %c0_i32, %arg1 : i32, i32, i32
  }
}

</mosaic_0001>

<bundles_post_ra>
// kernel: tpu_custom_call.1
= control target key start
LH: loop header
LB: loop body
LE: loop exit
PB: predicated region body
PF: predicated region fallthrough
CT: control target
= control target key end

     0   :  { %8 = vsyncpa [#allocation3], 0  ;;  %s810_s0 = inlined_call_operand.vmem [shape: f32[2,16,128], index: 0, kind: input, shape index: {}]   ;;  %s811_s1 = inlined_call_operand.vmem [shape: f32[32,16], index: 1, kind: input, shape index: {}]   ;;  %s812_s2 = inlined_call_operand.vmem [shape: f32[32,1], index: 2, kind: input, shape index: {}]   ;;  %s813_s3 = inlined_call_operand.hbm [shape: f32[2,32,128], index: 3, kind: output, shape index: {}]  }
   0x1   :  { %10 = vsyncpa [#allocation3 + $0x1], 0  ;;  %s668_s12 = smov 0   ;;  %s670_s13 = smov 0  }
   0x2   :  { %s672_s14 = smov 0   ;;  %s674_s15 = smov 0  }
   0x3   :  { %s676_s16 = smov 0   ;;  %s678_s17 = smov 0  }
   0x4 LB: > { %s447_s18 = sadd.s32 4294967295, %s642_s17   ;;  %s448_s19 = sadd.s32 4294967294, %s642_s17   ;;  %s642_s17 = sphi %s678_s17, %s16_s17   ;;  %s638_s16 = sphi %s676_s16, %s820_s16   ;;  %s634_s15 = sphi %s674_s15, %s819_s15   ;;  %s630_s14 = sphi %s672_s14, %s818_s14   ;;  %s626_s13 = sphi %s670_s13, %s817_s13   ;;  %s622_s12 = sphi %s668_s12, %s816_s12  }
   0x5   : > { %s28_s20 = sadd.s32 1, %s638_s16  ;;  %s107_s21 = sadd.s32 1, %s630_s14 }
   0x6   : > { %p30_p0 = scmp.ge.s32.totalorder %s28_s20, 2  ;;  %p117_p1 = scmp.ne.s32.totalorder %s630_s14, %s626_s13 }
   0x7   : > { %p118_p2 = scmp.eq.s32.totalorder %s447_s18, 1  ;;  %p123_p3 = scmp.ne.s32.totalorder %s626_s13, %s622_s12 }
   0x8   : > { %s822_s20 = smov (%p30_p0, %s28_s20), 0  ;;  %p124_p5 = scmp.eq.s32.totalorder %s448_s19, 1 }
   0x9   : > { %p708_p4 = por %p118_p2, %p117_p1  ;;  %s102_s23 = ssub.s32 %s638_s16, %s822_s20 }
   0xa   : > { %p451_p6 = scmp.ge.s32.totalorder %s642_s17, 1  ;;  %p105_p7 = scmp.eq.s32.totalorder %s102_s23, 0 }
   0xb   : > { %p715_p8 = por %p124_p5, %p123_p3  ;;  %p159_p9 = scmp.lt.s32.totalorder %s642_s17, 3 }
   0xc   : > { %s721_s25 = scalar_select %p105_p7, %s630_s14, %s107_s21  }
   0xd   : > { %p160_p10 = pnand %p451_p6, %p159_p9 }
   0xe   : > { %p186_p11 = scmp.lt.s32.totalorder (!%p160_p10), %s634_s15, 1  ;;  %s183_s30 = sand.u32 (!%p160_p10), 1, %s626_s13  }
   0xf   : > { %163 = sbr.rel (%p160_p10) target bundleno = 275 (0x113), region = 32  ;;  %s452_s4 = sshll.u32 (!%p160_p10), %s183_s30, 5 }
  0x10   : > { %s185_s5 = scalar_lea.vmem (!%p160_p10), [#allocation2], %s452_s4  ;;  %s645_s18 = smov (!%p160_p10), [#allocation2]  }
  0x11   : > { %s369_s6 = sshll.u32 (!%p160_p10), %s185_s5, 4  ;;  %s570_s19 = sshll.u32 (!%p160_p10), %s645_s18, 4  ;;  %s758_s6 = int_to_ptr.vmem [resolvable:$true] %s369_s6  ;;  %s571_s19 = int_to_ptr.vmem [resolvable:$false] %s570_s19 }
  0x12   : > { %s572_s21 = scalar_lea.vmem (!%p160_p10), %s571_s19, 1024  ;;  %p573_p1 = scmp.lt.s32.totalorder (!%p160_p10), %s758_s6, %s571_s19 }
  0x14   : > { %v194_v0 = vld [vmem:[%s811_s1] sm:$0xff]  ;;  %vm224_vm0 = vcmask 130048   ;;  %v196_v1 = vld [vmem:[%s811_s1 + $0x10] sm:$0xff]  ;;  %s187_s7 = scalar_select %p186_p11, %s634_s15, 1  ;;  %v644_v4 = vmov 0   ;;  %v195_v7 = vld [vmem:[%s811_s1 + $0x8] sm:$0xff] }
  0x15   : > { %480 = vmatprep.mubr.msk.f32.mxu0 %vm224_vm0, %v194_v0  ;;  %483 = vmatprep.mubr.msk.f32.mxu1 %vm224_vm0, %v196_v1  ;;  %v202_v2 = vld [vmem:[%s812_s2 + $0x10] sm:$0xff]  ;;  %v200_v3 = vld [vmem:[%s812_s2] sm:$0xff]  ;;  %v197_v8 = vld [vmem:[%s811_s1 + $0x18] sm:$0xff] }
  0x16   : > { %549 = vset.pattern.permute.xlu1 %v644_v4  ;;  %548 = vset.pattern.permute.xlu0 %v644_v4  ;;  %s468_s8 = sshll.u32 %s187_s7, 4  ;;  %v203_v9 = vld [vmem:[%s812_s2 + $0x18] sm:$0xff]  ;;  %v201_v10 = vld [vmem:[%s812_s2 + $0x8] sm:$0xff]  ;;  %s469_s7 = sshll.u32 %s634_s15, 9 }
  0x17   : > { %216 = vperm.xlu1 %549, %v202_v2   ;;  %206 = vperm.xlu0 %548, %v200_v3   ;;  %s193_s11 = scalar_lea.vmem %s810_s0, %s468_s8  ;;  %s763_s10 = scalar_lea.hbm %s813_s3, %s469_s7 }
  0x18   : > { %v199_v5 = vld [vmem:[%s193_s11 + $0x8] sm:$0xff]  ;;  %v198_v6 = vld [vmem:[%s193_s11] sm:$0xff]  ;;  %s765_s15 = scalar_lea.sflag [#allocation3], %s183_s30  ;;  %s566_s11 = scalar_lea.vmem %s758_s6, 512 }
  0x19   : > { %476 = vmatprep.subr.mxu0 %v199_v5  ;;  %486 = vmatprep.subr.mxu1 %v199_v5  ;;  %p567_p12 = scmp.ne.s32.totalorder %s758_s6, %s566_s11  ;;  %p574_p2 = scmp.lt.s32.totalorder %s572_s21, %s566_s11 }
  0x1a   : > { %477 = vmatpush3.msra.mxu0 %v199_v5  ;;  %488 = vmatpush3.msra.mxu1 %v199_v5 }
  0x1b   : > { %478 = vmatprep.subr.mxu0 %v198_v6  ;;  %487 = vmatprep.subr.mxu1 %v198_v6  ;;  %p568_p13 = pnand %p567_p12, %p708_p4  ;;  %p575_p3 = por %p574_p2, %p573_p1 }
  0x1c   : > { %479 = vmatpush3.msra.mxu0 %v198_v6  ;;  %489 = vmatpush3.msra.mxu1 %v198_v6 }
  0x1d   : > { %481 = vmatmul.mubr.msk.f32.vlgmr.msra.gmra.mxu0 %vm224_vm0, %v195_v7  ;;  %484 = vmatmul.mubr.msk.f32.vlgmr.msra.gmra.mxu1 %vm224_vm0, %v197_v8  ;;  %p569_p0 = pneg %p568_p13 }
  0x1e   : > { %221 = vperm.xlu1 %549, %v203_v9   ;;  %211 = vperm.xlu0 %548, %v201_v10  }
  0x1f   : > { %p576_p5 = pnand %p575_p3, %p569_p0 }
  0x92   : > { %v217_v11 = vpop.permute.xlu1 %216  ;;  %v207_v12 = vpop.permute.xlu0 %206 }
  0x99   : > { %v222_v13 = vpop.permute.xlu1 %221  ;;  %v212_v14 = vpop.permute.xlu0 %211 }
  0xdd   : > { %v482_v15 = vpop.f32.mrf.mxu0  ;;  %v485_v16 = vpop.f32.mrf.mxu1 }
  0xde   : > { %v309_v17 = vadd.f32 %v482_v15, %v212_v14  ;;  %v319_v18 = vadd.f32 %v485_v16, %v222_v13 }
  0xdf   : > { %v303_v19 = vpop.f32.mrf.mxu0  ;;  %v313_v20 = vpop.f32.mrf.mxu1 }
  0xe0   : > { %v460_v21 = vmul.f32 -1.442695, %v309_v17  ;;  %v462_v22 = vmul.f32 -1.442695, %v319_v18  ;;  %v304_v23 = vadd.f32 %v303_v19, %v207_v12  ;;  %v314_v24 = vadd.f32 %v313_v20, %v217_v11 }
  0xe2   : > { %550 = vpow2.f32 %v460_v21  ;;  %v459_v25 = vmul.f32 -1.442695, %v304_v23  ;;  %v461_v26 = vmul.f32 -1.442695, %v314_v24 }
  0xe3   : > { %552 = vpow2.f32 %v462_v22 }
  0xe4   : > { %554 = vpow2.f32 %v459_v25 }
  0xe5   : > { %556 = vpow2.f32 %v461_v26 }
  0xef   : > { %v551_v27 = vpop.eup %550 }
  0xf0   : > { %v553_v28 = vpop.eup %552  ;;  %v335_v29 = vadd.f32 1.0, %v551_v27 }
  0xf1   : > { %v555_v30 = vpop.eup %554  ;;  %v337_v31 = vadd.f32 1.0, %v553_v28 }
  0xf2   : > { %v557_v32 = vpop.eup %556  ;;  %558 = vrcp.f32 %v335_v29  ;;  %v334_v33 = vadd.f32 1.0, %v555_v30 }
  0xf3   : > { %560 = vrcp.f32 %v337_v31  ;;  %v336_v34 = vadd.f32 1.0, %v557_v32 }
  0xf4   : > { %562 = vrcp.f32 %v334_v33 }
  0xf5   : > { %564 = vrcp.f32 %v336_v34 }
  0xff   : > { %v559_v35 = vpop.eup %558 }
 0x100   : > { %v561_v36 = vpop.eup %560  ;;  %v347_v37 = vmul.f32 %v559_v35, %v309_v17 }
 0x101   : > { %v563_v38 = vpop.eup %562  ;;  %v349_v39 = vmul.f32 %v561_v36, %v319_v18 }
 0x102   : > { %v565_v40 = vpop.eup %564  ;;  %351 = vst [vmem:[%s185_s5 + $0x8] sm:$0xff] %v347_v37  ;;  %v346_v41 = vmul.f32 %v563_v38, %v304_v23 }
 0x103   : > { %353 = vst [vmem:[%s185_s5 + $0x18] sm:$0xff] %v349_v39  ;;  %v348_v42 = vmul.f32 %v565_v40, %v314_v24 }
 0x104   : > { %350 = vst [vmem:[%s185_s5] sm:$0xff] %v346_v41 }
 0x105   : > { %352 = vst [vmem:[%s185_s5 + $0x10] sm:$0xff] %v348_v42 }
 0x106   : > { %579 = shalt.err (!%p576_p5)
}
 0x107   : > { %s580_s23 = scalar_lea.hbm %s763_s10, 512  ;;  %s584_s28 = scalar_lea.hbm %s813_s3, 1024 }
 0x108   : > { %p581_p6 = scmp.ne.s32.totalorder %s763_s10, %s580_s23  ;;  %p585_p10 = scmp.lt.s32.totalorder %s763_s10, %s813_s3 }
 0x109   : > { %p586_p11 = scmp.lt.s32.totalorder %s584_s28, %s580_s23 }
 0x10a   : > { %p582_p7 = pnand %p581_p6, %p708_p4 }
 0x10b   : > { %p587_p12 = por %p586_p11, %p585_p10 }
 0x10c   : > { %p583_p9 = pneg %p582_p7 }
 0x10e   : > { %p588_p13 = pnand %p587_p12, %p583_p9 }
 0x110   : > { %591 = shalt.err (!%p588_p13)
}
 0x111   : > { %s646_s4 = smov 128   ;;  %s647_s5 = smov 8  }
 0x112   : > { %490 = dma.vmem_to_hbm [thread:$0]  (%p708_p4), %s758_s6, 512, %s763_s10, %s765_s15, %s646_s4, %s646_s4, %s647_s5  }
 0x113 PF: > { %p496_p0 = scmp.ge.s32.totalorder %s642_s17, 2  ;;  %s384_s7 = sand.u32 1, %s622_s12  }
 0x114   : > { %s385_s8 = scalar_lea.sflag [#allocation3], %s384_s7 }
 0x115   : > { %p493_p1 = pnand %p496_p0, %p715_p8 }
 0x117   : > { %p494_p2 = pneg %p493_p1 }
 0x119   : > { %617 = dma.done.wait (%p494_p2), %s385_s8, 512  }
 0x11a   : > { %619 = vsyncadd (%p494_p2), %s385_s8, 4294966784  ;;  %s16_s17 = sadd.s32 1, %s642_s17   ;;  %s816_s12 = smov %s626_s13 }
 0x11b   : > { %p13_p3 = scmp.ge.s32.totalorder %s16_s17, 4   ;;  %s817_s13 = smov %s630_s14 }
 0x11c   : > { %s818_s14 = smov %s721_s25  ;;  %s819_s15 = smov %s638_s16 }
 0x11d   : > { %s820_s16 = smov %s822_s20  ;;  %15 = sbr.rel (!%p13_p3) target bundleno = 4 (0x4), region = 67 }
 0x122   :  { %390 = vsyncpa [#allocation3], 1 }
 0x123   :  { %392 = vsyncpa [#allocation3 + $0x1], 1 }

</bundles_post_ra>
